<compile_context>
chip_gen: v5e
topology: v5e:2x2
jax: 0.10.0
libtpu: 0.0.40
codegen_flags: <defaults>
</compile_context>

<pallas_src>
import numpy as np
import jax
import jax.numpy as jnp
from jax.experimental import pallas as pl
from jax.experimental.pallas import tpu as pltpu


_LANES = 128
_CORE_SPLITS = 2      # shard reduction for v7x's 2 TensorCores; harmless on 1-TC chips


def _cdiv(a, b):
    return -(-a // b)


# ----------------------------- kernel ---------------------------------------


def loss_acc_kernel(fine_ref, coarse_ref, mask_ref, w_ref, acc_ref):
    # acc_ref: (8, 128) accumulator, resident across the "arbitrary" grid axis.
    @pl.when(pl.program_id(1) == 0)
    def _():
        acc_ref[...] = jnp.zeros_like(acc_ref)

    m = mask_ref[...]                                # (tr, 128)
    w = w_ref[...]                                   # valid / min-rule / mean folded in
    df = jnp.clip(fine_ref[...], 0.0, 1.0) - m       # torch.clamp + MSE diff (fine)
    dc = jnp.clip(coarse_ref[...], 0.0, 1.0) - m     # torch.clamp + MSE diff (coarse)
    contrib = (df * df + dc * dc) * w                # (tr, 128)
    # Fold tile rows into the resident (8, 128) accumulator: pure VPU vreg adds,
    # the reshape groups contiguous (8, 128) native tiles (no layout change).
    acc_ref[...] += jnp.sum(contrib.reshape(-1, 8, _LANES), axis=0)


# ----------------------------- wrapper ---------------------------------------


def opacity_loss(opacity_fine, opacity_coarse, valid_mask, instance_mask,
                 instance_mask_weight, coef=1.0, tile_rows=2048):
    """Pallas/TPU implementation of OpacityLoss.forward (coarse branch present).

    Fully traceable (jax.jit-safe with tile_rows static). Returns NaN where the
    PyTorch module would return None (no valid rays)."""
    # TODO(synk): the PyTorch module also supports a fine-only branch (no
    # 'opacity_unmasked_coarse'); this implementation always expects both.

    # (1, N, C) squeeze branch of the PyTorch module.
    if instance_mask.ndim == 3 and instance_mask.shape[0] == 1:
        instance_mask = instance_mask[0]
        instance_mask_weight = instance_mask_weight[0]

    N, C = instance_mask.shape
    valid = valid_mask.reshape(-1).astype(jnp.float32)           # (N,)
    w = instance_mask_weight.astype(jnp.float32)                 # (N, C)
    m = instance_mask.astype(jnp.float32)
    fine = opacity_fine.astype(jnp.float32)
    coarse = opacity_coarse.astype(jnp.float32)

    nv = jnp.sum(valid)                                          # number of valid rays
    nv_safe = jnp.maximum(nv, 1.0)

    # Background-weight rule: entries equal to the min over VALID rows -> 0.
    # Exact f32 equality on the unmodified stored values (matches torch).
    w0 = w[:, 0]
    bg_min = jnp.min(jnp.where(valid > 0.0, w0, jnp.inf))
    w_bg = jnp.where(w0 == bg_min, 0.0, w0)

    # Fold valid mask + per-term mean normalisation into one effective weight:
    #   loss = sum((clamp(fine)-m)^2 * w_eff) + sum((clamp(coarse)-m)^2 * w_eff)
    fg_norm = 1.0 / (nv_safe * float(max(C - 1, 1)))
    bg_norm = 1.0 / nv_safe
    w_eff = jnp.concatenate([(w_bg * bg_norm)[:, None], w[:, 1:] * fg_norm],
                            axis=1) * valid[:, None]             # (N, C)

    # Lane-dense layout: flatten row-major to (rows, 128) so every vreg is full.
    flat_len = N * C
    rows = _cdiv(flat_len, _LANES)
    per_core_rows = _cdiv(_cdiv(rows, _CORE_SPLITS), 8) * 8      # sublane multiple
    tr = max(8, min(_cdiv(tile_rows, 8) * 8, per_core_rows))     # actual tile rows
    tiles_per_core = _cdiv(per_core_rows, tr)
    total_rows = _CORE_SPLITS * tiles_per_core * tr
    pad = total_rows * _LANES - flat_len

    def lane_dense(x):
        flat = x.reshape(-1)
        if pad:                                                  # static; copy only if needed
            flat = jnp.pad(flat, (0, pad))
        return flat.reshape(total_rows, _LANES)

    fine_ld, coarse_ld, m_ld, w_ld = map(lane_dense, (fine, coarse, m, w_eff))

    in_spec = pl.BlockSpec((tr, _LANES),
                           lambda c, i: (c * tiles_per_core + i, 0))
    acc = pl.pallas_call(
        loss_acc_kernel,
        out_shape=jax.ShapeDtypeStruct((_CORE_SPLITS, 8, _LANES), jnp.float32),
        grid_spec=pltpu.PrefetchScalarGridSpec(
            num_scalar_prefetch=0,
            grid=(_CORE_SPLITS, tiles_per_core),
            in_specs=[in_spec, in_spec, in_spec, in_spec],
            out_specs=pl.BlockSpec((None, 8, _LANES), lambda c, i: (c, 0, 0))),
        compiler_params=pltpu.CompilerParams(
            dimension_semantics=("parallel", "arbitrary")),
    )(fine_ld, coarse_ld, m_ld, w_ld)

    loss = jnp.sum(acc) * coef
    # TODO(synk): PyTorch returns None (and prints) when no ray is valid; in a
    # traced setting we signal that case with NaN instead of a Python None.
    return jnp.where(nv > 0.0, loss, jnp.float32(jnp.nan))


# ----------------------------- reference -------------------------------------


def opacity_loss_ref(opacity_fine, opacity_coarse, valid_mask, instance_mask,
                     instance_mask_weight, coef=1.0):
    """NumPy transcription of the PyTorch forward (for verification)."""
    vm = np.asarray(valid_mask).reshape(-1).astype(bool)
    im = np.asarray(instance_mask, np.float32)[vm, :]
    w = np.asarray(instance_mask_weight, np.float32)[vm, :].copy()
    wbg = w[:, 0:1].copy()
    wbg[wbg == wbg.min()] = 0.0
    of = np.clip(np.asarray(opacity_fine, np.float32)[vm, :], 0.0, 1.0)
    oc = np.clip(np.asarray(opacity_coarse, np.float32)[vm, :], 0.0, 1.0)
    loss = (((of[:, 1:] - im[:, 1:]) ** 2) * w[:, 1:]).mean()
    loss += (((of[:, 0:1] - im[:, 0:1]) ** 2) * wbg).mean()
    loss += (((oc[:, 1:] - im[:, 1:]) ** 2) * w[:, 1:]).mean()
    loss += (((oc[:, 0:1] - im[:, 0:1]) ** 2) * wbg).mean()
    return coef * loss


# ----------------------------- demo ------------------------------------------


if __name__ == "__main__":
    key = jax.random.PRNGKey(0)
    kv, ki, kw, kf, kc = jax.random.split(key, 5)

    N, C = 2048, 8      # N rays, C = 1 background + (C-1) instance channels
    coef = 1.0

    valid_mask = jax.random.bernoulli(kv, 0.7, (N,))
    valid_mask = valid_mask.at[0].set(True)                       # guarantee non-empty
    labels = jax.random.randint(ki, (N,), 0, C)
    instance_mask = jax.nn.one_hot(labels, C, dtype=jnp.float32)  # (N, C)
    instance_mask_weight = jax.random.uniform(kw, (N, C), jnp.float32, 0.1, 2.0)
    opacity_fine = jax.random.uniform(kf, (N, C), jnp.float32, -0.2, 1.2)
    opacity_coarse = jax.random.uniform(kc, (N, C), jnp.float32, -0.2, 1.2)

    fn = jax.jit(opacity_loss, static_argnames=("tile_rows",))

    # small tile -> multi-step reduction grid (exercises the resident accumulator)
    loss_small = jax.block_until_ready(
        fn(opacity_fine, opacity_coarse, valid_mask, instance_mask,
           instance_mask_weight, coef, tile_rows=16))
    # default (large) tile
    loss_big = jax.block_until_ready(
        fn(opacity_fine, opacity_coarse, valid_mask, instance_mask,
           instance_mask_weight, coef))

    ref = opacity_loss_ref(opacity_fine, opacity_coarse, valid_mask,
                           instance_mask, instance_mask_weight, coef=coef)
    np.testing.assert_allclose(np.asarray(loss_small), ref, rtol=1e-4, atol=1e-6)
    np.testing.assert_allclose(np.asarray(loss_big), ref, rtol=1e-4, atol=1e-6)
    print("KERNEL_OK")
</pallas_src>

<mosaic_0001>
module attributes {stable_mosaic.version = 11 : i64} {
  func.func @loss_acc_kernel(%arg0: i32, %arg1: i32, %arg2: memref<16x128xf32, #tpu.memory_space<vmem>>, %arg3: memref<16x128xf32, #tpu.memory_space<vmem>>, %arg4: memref<16x128xf32, #tpu.memory_space<vmem>>, %arg5: memref<16x128xf32, #tpu.memory_space<vmem>>, %arg6: memref<1x8x128xf32, #tpu.memory_space<vmem>>) attributes {dimension_semantics = [#tpu.dimension_semantics<parallel>, #tpu.dimension_semantics<arbitrary>], iteration_bounds = array<i64: 2, 4>, scalar_prefetch = 0 : i64, scratch_operands = 0 : i64, tpu.core_type = #tpu.core_type<tc>, window_params = [{transform_indices = @transform_0, window_bounds = array<i64: 16, 128>}, {transform_indices = @transform_1, window_bounds = array<i64: 16, 128>}, {transform_indices = @transform_2, window_bounds = array<i64: 16, 128>}, {transform_indices = @transform_3, window_bounds = array<i64: 16, 128>}, {transform_indices = @transform_4, window_bounds = array<i64: 1, 8, 128>}]} {
    %c0_i32 = arith.constant 0 : i32
    %0 = arith.cmpi eq, %arg1, %c0_i32 : i32
    %1 = arith.extui %0 : i1 to i32
    %c0_i32_0 = arith.constant 0 : i32
    %2 = arith.cmpi ne, %1, %c0_i32_0 : i32
    scf.if %2 {
      %cst_18 = arith.constant 0.000000e+00 : f32
      %29 = vector.broadcast %cst_18 : f32 to vector<8x128xf32>
      %c0_19 = arith.constant 0 : index
      %c0_20 = arith.constant 0 : index
      %c0_21 = arith.constant 0 : index
      %30 = vector.load %arg6[%c0_19, %c0_20, %c0_21] : memref<1x8x128xf32, #tpu.memory_space<vmem>>, vector<1x8x128xf32>
      %31 = vector.shape_cast %30 : vector<1x8x128xf32> to vector<8x128xf32>
      %32 = vector.shape_cast %29 : vector<8x128xf32> to vector<1x8x128xf32>
      tpu.vector_store %arg6[%c0_19, %c0_20, %c0_21], %32 {strides = array<i32>} : memref<1x8x128xf32, #tpu.memory_space<vmem>>, vector<1x8x128xf32>,
    } else {
    }
    %c0 = arith.constant 0 : index
    %c0_1 = arith.constant 0 : index
    %3 = vector.load %arg4[%c0, %c0_1] : memref<16x128xf32, #tpu.memory_space<vmem>>, vector<16x128xf32>
    %c0_2 = arith.constant 0 : index
    %c0_3 = arith.constant 0 : index
    %4 = vector.load %arg5[%c0_2, %c0_3] : memref<16x128xf32, #tpu.memory_space<vmem>>, vector<16x128xf32>
    %c0_4 = arith.constant 0 : index
    %c0_5 = arith.constant 0 : index
    %5 = vector.load %arg2[%c0_4, %c0_5] : memref<16x128xf32, #tpu.memory_space<vmem>>, vector<16x128xf32>
    %cst = arith.constant 0.000000e+00 : f32
    %cst_6 = arith.constant 1.000000e+00 : f32
    %6 = vector.broadcast %cst : f32 to vector<16x128xf32>
    %7 = arith.maximumf %6, %5 : vector<16x128xf32>
    %8 = vector.broadcast %cst_6 : f32 to vector<16x128xf32>
    %9 = arith.minimumf %8, %7 : vector<16x128xf32>
    %10 = arith.subf %9, %3 : vector<16x128xf32>
    %c0_7 = arith.constant 0 : index
    %c0_8 = arith.constant 0 : index
    %11 = vector.load %arg3[%c0_7, %c0_8] : memref<16x128xf32, #tpu.memory_space<vmem>>, vector<16x128xf32>
    %cst_9 = arith.constant 0.000000e+00 : f32
    %cst_10 = arith.constant 1.000000e+00 : f32
    %12 = vector.broadcast %cst_9 : f32 to vector<16x128xf32>
    %13 = arith.maximumf %12, %11 : vector<16x128xf32>
    %14 = vector.broadcast %cst_10 : f32 to vector<16x128xf32>
    %15 = arith.minimumf %14, %13 : vector<16x128xf32>
    %16 = arith.subf %15, %3 : vector<16x128xf32>
    %17 = arith.mulf %10, %10 : vector<16x128xf32>
    %18 = arith.mulf %16, %16 : vector<16x128xf32>
    %19 = arith.addf %17, %18 : vector<16x128xf32>
    %20 = arith.mulf %19, %4 : vector<16x128xf32>
    %c0_11 = arith.constant 0 : index
    %c0_12 = arith.constant 0 : index
    %c0_13 = arith.constant 0 : index
    %21 = vector.load %arg6[%c0_11, %c0_12, %c0_13] : memref<1x8x128xf32, #tpu.memory_space<vmem>>, vector<1x8x128xf32>
    %22 = vector.shape_cast %21 : vector<1x8x128xf32> to vector<8x128xf32>
    %23 = vector.shape_cast %20 : vector<16x128xf32> to vector<2x8x128xf32>
    %cst_14 = arith.constant dense<0.000000e+00> : vector<8x128xf32>
    %24 = vector.multi_reduction <add>, %23, %cst_14 [0] : vector<2x8x128xf32> to vector<8x128xf32>
    %25 = arith.addf %22, %24 : vector<8x128xf32>
    %c0_15 = arith.constant 0 : index
    %c0_16 = arith.constant 0 : index
    %c0_17 = arith.constant 0 : index
    %26 = vector.load %arg6[%c0_15, %c0_16, %c0_17] : memref<1x8x128xf32, #tpu.memory_space<vmem>>, vector<1x8x128xf32>
    %27 = vector.shape_cast %26 : vector<1x8x128xf32> to vector<8x128xf32>
    %28 = vector.shape_cast %25 : vector<8x128xf32> to vector<1x8x128xf32>
    tpu.vector_store %arg6[%c0_15, %c0_16, %c0_17], %28 {strides = array<i32>} : memref<1x8x128xf32, #tpu.memory_space<vmem>>, vector<1x8x128xf32>,
    return
  }
  func.func @transform_0(%arg0: i32, %arg1: i32) -> (i32, i32) {
    %c4_i32 = arith.constant 4 : i32
    %0 = arith.muli %arg0, %c4_i32 : i32
    %1 = arith.addi %0, %arg1 : i32
    %c0_i32 = arith.constant 0 : i32
    %c0_i32_0 = arith.constant 0 : i32
    return %1, %c0_i32 : i32, i32
  }
  func.func @transform_1(%arg0: i32, %arg1: i32) -> (i32, i32) {
    %c4_i32 = arith.constant 4 : i32
    %0 = arith.muli %arg0, %c4_i32 : i32
    %1 = arith.addi %0, %arg1 : i32
    %c0_i32 = arith.constant 0 : i32
    %c0_i32_0 = arith.constant 0 : i32
    return %1, %c0_i32 : i32, i32
  }
  func.func @transform_2(%arg0: i32, %arg1: i32) -> (i32, i32) {
    %c4_i32 = arith.constant 4 : i32
    %0 = arith.muli %arg0, %c4_i32 : i32
    %1 = arith.addi %0, %arg1 : i32
    %c0_i32 = arith.constant 0 : i32
    %c0_i32_0 = arith.constant 0 : i32
    return %1, %c0_i32 : i32, i32
  }
  func.func @transform_3(%arg0: i32, %arg1: i32) -> (i32, i32) {
    %c4_i32 = arith.constant 4 : i32
    %0 = arith.muli %arg0, %c4_i32 : i32
    %1 = arith.addi %0, %arg1 : i32
    %c0_i32 = arith.constant 0 : i32
    %c0_i32_0 = arith.constant 0 : i32
    return %1, %c0_i32 : i32, i32
  }
  func.func @transform_4(%arg0: i32, %arg1: i32) -> (i32, i32, i32) {
    %c0_i32 = arith.constant 0 : i32
    %c0_i32_0 = arith.constant 0 : i32
    %c0_i32_1 = arith.constant 0 : i32
    return %arg0, %c0_i32, %c0_i32_0 : i32, i32, i32
  }
}

</mosaic_0001>

<bundles_post_ra>
// kernel: mul.1
= control target key start
LH: loop header
LB: loop body
LE: loop exit
PB: predicated region body
PF: predicated region fallthrough
CT: control target
= control target key end

     0   :  { %s364_s0 = inlined_call_operand.vmem [shape: f32[128,128], index: 0, kind: input, shape index: {}]   ;;  %s365_s1 = inlined_call_operand.vmem [shape: f32[128,128], index: 1, kind: input, shape index: {}]   ;;  %s366_s2 = inlined_call_operand.vmem [shape: f32[128,128], index: 2, kind: output, shape index: {}]  }
   0x1   :  { %v3_v0 = vld [vmem:[%s364_s0] sm:$0xff]  ;;  %v160_v2 = vld [vmem:[%s364_s0 + $0x8] sm:$0xff]  ;;  %v163_v5 = vld [vmem:[%s364_s0 + $0x10] sm:$0xff] }
   0x2   :  { %v4_v1 = vld [vmem:[%s365_s1] sm:$0xff]  ;;  %v161_v4 = vld [vmem:[%s365_s1 + $0x8] sm:$0xff]  ;;  %v164_v6 = vld [vmem:[%s365_s1 + $0x10] sm:$0xff] }
   0x3   :  { %v7_v3 = vmul.f32 %v4_v1, %v3_v0  ;;  %v16_v7 = vmul.f32 %v161_v4, %v160_v2  ;;  %v26_v8 = vmul.f32 %v164_v6, %v163_v5  ;;  %v166_v9 = vld [vmem:[%s364_s0 + $0x18] sm:$0xff]  ;;  %v169_v11 = vld [vmem:[%s364_s0 + $0x20] sm:$0xff]  ;;  %v172_v14 = vld [vmem:[%s364_s0 + $0x28] sm:$0xff] }
   0x4   :  { %v167_v10 = vld [vmem:[%s365_s1 + $0x18] sm:$0xff]  ;;  %v170_v13 = vld [vmem:[%s365_s1 + $0x20] sm:$0xff]  ;;  %v173_v15 = vld [vmem:[%s365_s1 + $0x28] sm:$0xff] }
   0x5   :  { %9 = vst [vmem:[%s366_s2] sm:$0xff] %v7_v3  ;;  %v36_v12 = vmul.f32 %v167_v10, %v166_v9  ;;  %v46_v16 = vmul.f32 %v170_v13, %v169_v11  ;;  %v56_v17 = vmul.f32 %v173_v15, %v172_v14  ;;  %v175_v18 = vld [vmem:[%s364_s0 + $0x30] sm:$0xff]  ;;  %v178_v20 = vld [vmem:[%s364_s0 + $0x38] sm:$0xff]  ;;  %v181_v23 = vld [vmem:[%s364_s0 + $0x40] sm:$0xff] }
   0x6   :  { %162 = vst [vmem:[%s366_s2 + $0x8] sm:$0xff] %v16_v7  ;;  %v176_v19 = vld [vmem:[%s365_s1 + $0x30] sm:$0xff]  ;;  %v179_v22 = vld [vmem:[%s365_s1 + $0x38] sm:$0xff]  ;;  %v182_v24 = vld [vmem:[%s365_s1 + $0x40] sm:$0xff] }
   0x7   :  { %165 = vst [vmem:[%s366_s2 + $0x10] sm:$0xff] %v26_v8  ;;  %v66_v21 = vmul.f32 %v176_v19, %v175_v18  ;;  %v76_v25 = vmul.f32 %v179_v22, %v178_v20  ;;  %v86_v26 = vmul.f32 %v182_v24, %v181_v23  ;;  %v184_v27 = vld [vmem:[%s364_s0 + $0x48] sm:$0xff]  ;;  %v187_v29 = vld [vmem:[%s364_s0 + $0x50] sm:$0xff]  ;;  %v190_v32 = vld [vmem:[%s364_s0 + $0x58] sm:$0xff] }
   0x8   :  { %168 = vst [vmem:[%s366_s2 + $0x18] sm:$0xff] %v36_v12  ;;  %v185_v28 = vld [vmem:[%s365_s1 + $0x48] sm:$0xff]  ;;  %v188_v31 = vld [vmem:[%s365_s1 + $0x50] sm:$0xff]  ;;  %v191_v33 = vld [vmem:[%s365_s1 + $0x58] sm:$0xff] }
   0x9   :  { %171 = vst [vmem:[%s366_s2 + $0x20] sm:$0xff] %v46_v16  ;;  %v96_v30 = vmul.f32 %v185_v28, %v184_v27  ;;  %v106_v34 = vmul.f32 %v188_v31, %v187_v29  ;;  %v116_v35 = vmul.f32 %v191_v33, %v190_v32  ;;  %v193_v36 = vld [vmem:[%s364_s0 + $0x60] sm:$0xff]  ;;  %v196_v38 = vld [vmem:[%s364_s0 + $0x68] sm:$0xff]  ;;  %v199_v41 = vld [vmem:[%s364_s0 + $0x70] sm:$0xff] }
   0xa   :  { %174 = vst [vmem:[%s366_s2 + $0x28] sm:$0xff] %v56_v17  ;;  %v194_v37 = vld [vmem:[%s365_s1 + $0x60] sm:$0xff]  ;;  %v197_v40 = vld [vmem:[%s365_s1 + $0x68] sm:$0xff]  ;;  %v200_v42 = vld [vmem:[%s365_s1 + $0x70] sm:$0xff] }
   0xb   :  { %177 = vst [vmem:[%s366_s2 + $0x30] sm:$0xff] %v66_v21  ;;  %v126_v39 = vmul.f32 %v194_v37, %v193_v36  ;;  %v136_v43 = vmul.f32 %v197_v40, %v196_v38  ;;  %v146_v44 = vmul.f32 %v200_v42, %v199_v41  ;;  %v202_v45 = vld [vmem:[%s364_s0 + $0x78] sm:$0xff] }
   0xc   :  { %180 = vst [vmem:[%s366_s2 + $0x38] sm:$0xff] %v76_v25  ;;  %v203_v46 = vld [vmem:[%s365_s1 + $0x78] sm:$0xff] }
   0xd   :  { %183 = vst [vmem:[%s366_s2 + $0x40] sm:$0xff] %v86_v26  ;;  %v156_v47 = vmul.f32 %v203_v46, %v202_v45 }
   0xe   :  { %186 = vst [vmem:[%s366_s2 + $0x48] sm:$0xff] %v96_v30 }
   0xf   :  { %189 = vst [vmem:[%s366_s2 + $0x50] sm:$0xff] %v106_v34 }
  0x10   :  { %192 = vst [vmem:[%s366_s2 + $0x58] sm:$0xff] %v116_v35 }
  0x11   :  { %195 = vst [vmem:[%s366_s2 + $0x60] sm:$0xff] %v126_v39 }
  0x12   :  { %198 = vst [vmem:[%s366_s2 + $0x68] sm:$0xff] %v136_v43 }
  0x13   :  { %201 = vst [vmem:[%s366_s2 + $0x70] sm:$0xff] %v146_v44 }
  0x14   :  { %204 = vst [vmem:[%s366_s2 + $0x78] sm:$0xff] %v156_v47 }

// kernel: opacity_loss.1
= control target key start
LH: loop header
LB: loop body
LE: loop exit
PB: predicated region body
PF: predicated region fallthrough
CT: control target
= control target key end

     0   :  { %s605_s15 = smov 0   ;;  %s607_s16 = smov 0   ;;  %s674_s0 = inlined_call_operand.vmem [shape: f32[128,128], index: 0, kind: input, shape index: {}]   ;;  %s675_s1 = inlined_call_operand.vmem [shape: f32[128,128], index: 1, kind: input, shape index: {}]   ;;  %s676_s2 = inlined_call_operand.vmem [shape: f32[128,128], index: 2, kind: input, shape index: {}]   ;;  %s677_s3 = inlined_call_operand.vmem [shape: f32[128,128], index: 3, kind: input, shape index: {}]   ;;  %s678_s4 = inlined_call_operand.vmem [shape: f32[2,8,128], index: 4, kind: output, shape index: {}]  }
   0x1   :  { %s609_s17 = smov 0   ;;  %s611_s18 = smov 0  }
   0x2   :  { %s613_s19 = smov 0  }
   0x3 LB: > { %s23_s20 = sadd.s32 1, %s569_s17  ;;  %s26_s21 = sadd.s32 1, %s573_s18  ;;  %s577_s19 = sphi %s613_s19, %s14_s19   ;;  %s573_s18 = sphi %s611_s18, %s682_s18   ;;  %s569_s17 = sphi %s609_s17, %s681_s17   ;;  %s565_s16 = sphi %s607_s16, %s680_s16   ;;  %s561_s15 = sphi %s605_s15, %s679_s15  }
   0x4   : > { %p24_p0 = scmp.ge.s32.totalorder %s23_s20, 4  ;;  %p481_p1 = scmp.ge.s32.totalorder %s577_s19, 1 }
   0x5   : > { %p240_p2 = scmp.lt.s32.totalorder %s577_s19, 9 }
   0x6   : > { %s684_s20 = smov (%p24_p0, %s23_s20), 0  ;;  %s686_s21 = smov (!%p24_p0, %s26_s21), %s573_s18 }
   0x7   : > { %p241_p3 = pnand %p481_p1, %p240_p2  ;;  %p28_p4 = scmp.ge.s32.totalorder %s686_s21, 2 }
   0x8   : > { %s482_s22 = sshll.u32 (!%p241_p3), %s565_s16, 2  ;;  %p328_p5 = scmp.lt.s32.totalorder (!%p241_p3), %s565_s16, 1 }
   0x9   : > { %s688_s21 = smov (%p28_p4, %s686_s21), 0  ;;  %244 = sbr.rel (%p241_p3) target bundleno = 44 (0x2c), region = 36 }
   0xa   : > { %s289_s23 = sadd.s32 (!%p241_p3), %s561_s15, %s482_s22  ;;  %p495_p7 = scmp.ne.s32.totalorder (!%p241_p3), %s561_s15, 0 }
   0xb   : > { %s483_s24 = sshll.u32 (!%p241_p3), %s289_s23, 1 }
   0xc   : > { %p291_p6 = scmp.lt.s32.totalorder (!%p241_p3), %s483_s24, 15 }
   0xe   : > { %s690_s16 = smov (!%p328_p5, %s565_s16), 1  ;;  %s692_s24 = smov (!%p291_p6, %s483_s24), 15 }
   0xf   : > { %s494_s25 = sshll.u32 %s690_s16, 3  ;;  %s484_s26 = sshll.u32 %s692_s24, 3 }
  0x10   : > { %s641_s29 = scalar_lea.vmem %s678_s4, %s494_s25  ;;  %s294_s6 = scalar_lea.vmem %s674_s0, %s484_s26 }
  0x11   : > { %s304_s9 = scalar_lea.vmem %s675_s1, %s484_s26  ;;  %s314_s12 = scalar_lea.vmem %s676_s2, %s484_s26 }
  0x12   : > { %s324_s16 = scalar_lea.vmem %s677_s3, %s484_s26  ;;  %335 = sbr.rel (%p495_p7) target bundleno = 25 (0x19), region = 40 }
  0x17   : > { %v579_v0 = vmov 0.0  }
  0x18   : > { %336 = vst [vmem:[%s641_s29] sm:$0xff] %v579_v0 }
  0x19 PF: > { %v341_v1 = vld [vmem:[%s294_s6] sm:$0xff]  ;;  %v342_v2 = vld [vmem:[%s294_s6 + $0x8] sm:$0xff] }
  0x1a   : > { %v343_v3 = vmax.f32 %v341_v1, 0.0  ;;  %v344_v4 = vmax.f32 %v342_v2, 0.0  ;;  %v349_v5 = vld [vmem:[%s304_s9] sm:$0xff]  ;;  %v350_v6 = vld [vmem:[%s304_s9 + $0x8] sm:$0xff] }
  0x1b   : > { %v337_v7 = vld [vmem:[%s314_s12] sm:$0xff]  ;;  %v338_v8 = vld [vmem:[%s314_s12 + $0x8] sm:$0xff]  ;;  %v351_v9 = vmax.f32 %v349_v5, 0.0  ;;  %v352_v10 = vmax.f32 %v350_v6, 0.0 }
  0x1c   : > { %v345_v11 = vmin.f32 %v343_v3, 1.0  ;;  %v346_v12 = vmin.f32 %v344_v4, 1.0  ;;  %v339_v23 = vld [vmem:[%s324_s16] sm:$0xff]  ;;  %v340_v24 = vld [vmem:[%s324_s16 + $0x8] sm:$0xff] }
  0x1d   : > { %v353_v13 = vmin.f32 %v351_v9, 1.0  ;;  %v354_v14 = vmin.f32 %v352_v10, 1.0 }
  0x1e   : > { %v347_v15 = vsub.f32 %v345_v11, %v337_v7  ;;  %v348_v16 = vsub.f32 %v346_v12, %v338_v8 }
  0x1f   : > { %v355_v17 = vsub.f32 %v353_v13, %v337_v7  ;;  %v356_v18 = vsub.f32 %v354_v14, %v338_v8  ;;  %v365_v29 = vld [vmem:[%s641_s29] sm:$0xff] }
  0x20   : > { %v357_v19 = vmul.f32 %v347_v15, %v347_v15  ;;  %v358_v20 = vmul.f32 %v348_v16, %v348_v16 }
  0x21   : > { %v359_v21 = vmul.f32 %v355_v17, %v355_v17  ;;  %v360_v22 = vmul.f32 %v356_v18, %v356_v18 }
  0x23   : > { %v361_v25 = vadd.f32 %v359_v21, %v357_v19  ;;  %v362_v26 = vadd.f32 %v360_v22, %v358_v20 }
  0x25   : > { %v363_v27 = vmul.f32 %v361_v25, %v339_v23  ;;  %v364_v28 = vmul.f32 %v362_v26, %v340_v24 }
  0x27   : > { %v366_v30 = vadd.f32 %v364_v28, %v363_v27 }
  0x29   : > { %v367_v31 = vadd.f32 %v366_v30, %v365_v29 }
  0x2b   : > { %368 = vst [vmem:[%s641_s29] sm:$0xff] %v367_v31 }
  0x2c PF: > { %s14_s19 = sadd.s32 1, %s577_s19   ;;  %s679_s15 = smov %s569_s17 }
  0x2d   : > { %p11_p8 = scmp.ge.s32.totalorder %s14_s19, 10   ;;  %s680_s16 = smov %s573_s18 }
  0x2e   : > { %s681_s17 = smov %s684_s20  ;;  %s682_s18 = smov %s688_s21 }
  0x2f   :  { %13 = sbr.rel (!%p11_p8) target bundleno = 3 (0x3), region = 79 }

</bundles_post_ra>
